<compile_context>
chip_gen: v7x
topology: tpu7x:2x2x1
jax: 0.10.0
libtpu: 0.0.40
codegen_flags: <defaults>
</compile_context>

<pallas_src>
import functools

import jax
import jax.numpy as jnp
from jax import lax
from jax.experimental import pallas as pl
from jax.experimental.pallas import tpu as pltpu


_LANE = 128
# Per-batch block budget for the fused path: double-buffered in + out plus
# masking temporaries stays well under the smallest scoped-VMEM default
# (16 MiB on v5e) and far under v7x's 64 MiB physical VMEM.
_FUSED_BLOCK_BYTES = 2 * 1024 * 1024
# Spatial tile budget for the two-pass streaming path.
_TWO_PASS_TILE_BYTES = 1 * 1024 * 1024
_VMEM_LIMIT_BYTES = 32 * 1024 * 1024


def _round_up(n, m):
    return (n + m - 1) // m * m


# ---------------------------------------------------------------------------
# Fused single-pass kernel: one batch element per grid step.
# ---------------------------------------------------------------------------
def _fused_kernel(x_ref, w1_ref, b1_ref, w2t_ref, b2_ref, o_ref, *, hw_true):
    # x_ref: (C, HWp)  w1: (C, Ch)  b1: (1, Ch)  w2t: (C, Ch)  b2: (C, 1)
    x = x_ref[...]
    c, hwp = x.shape

    if hwp != hw_true:
        # Mask the lane padding: 0 for the sum, -inf for the max.
        lane = lax.broadcasted_iota(jnp.int32, (c, hwp), 1)
        valid = lane < hw_true
        x_for_sum = jnp.where(valid, x, 0.0)
        x_for_max = jnp.where(valid, x, -jnp.inf)
    else:
        x_for_sum = x
        x_for_max = x

    # Fused spatial pooling: one pass over the block, lane reductions.
    avg_col = jnp.sum(x_for_sum, axis=-1, keepdims=True) * (1.0 / hw_true)  # (C, 1)
    max_col = jnp.max(x_for_max, axis=-1, keepdims=True)                    # (C, 1)

    w1 = w1_ref[...]     # (C, Ch)
    b1 = b1_ref[...]     # (1, Ch)
    w2t = w2t_ref[...]   # (C, Ch)
    b2 = b2_ref[...]     # (C, 1)

    def mlp(pool_col):
        # Tiny MLP on the VPU (broadcast-multiply-reduce); MXU is pointless at
        # hidden = C // 16 and keeping it off avoids push/pop latency in the
        # streaming pipeline.
        h = jnp.maximum(jnp.sum(w1 * pool_col, axis=0, keepdims=True) + b1, 0.0)  # (1, Ch)
        return jnp.sum(w2t * h, axis=1, keepdims=True) + b2                       # (C, 1)

    att = mlp(avg_col) + mlp(max_col)          # (C, 1)
    scale = jax.nn.sigmoid(att)                # (C, 1): channels on sublanes
    o_ref[...] = x * scale                     # broadcast along lanes, no relayout


def _channel_gate_fused(x_flat, w1, b1_row, w2t, b2_col, hw_true):
    B, C, HWp = x_flat.shape
    Ch = w1.shape[1]

    kernel = functools.partial(_fused_kernel, hw_true=hw_true)
    cost = pl.CostEstimate(
        flops=int(B * (3 * C * HWp + 8 * C * Ch)),
        transcendentals=int(B * C),
        bytes_accessed=int(2 * B * C * HWp * 4),
    )
    return pl.pallas_call(
        kernel,
        out_shape=jax.ShapeDtypeStruct((B, C, HWp), jnp.float32),
        grid_spec=pltpu.PrefetchScalarGridSpec(
            num_scalar_prefetch=0,
            grid=(B,),
            in_specs=[
                pl.BlockSpec((None, C, HWp), lambda b: (b, 0, 0)),  # x (per batch)
                pl.BlockSpec((C, Ch), lambda b: (0, 0)),            # w1   (resident)
                pl.BlockSpec((1, Ch), lambda b: (0, 0)),            # b1   (resident)
                pl.BlockSpec((C, Ch), lambda b: (0, 0)),            # w2^T (resident)
                pl.BlockSpec((C, 1), lambda b: (0, 0)),             # b2   (resident)
            ],
            out_specs=pl.BlockSpec((None, C, HWp), lambda b: (b, 0, 0)),
        ),
        compiler_params=pltpu.CompilerParams(
            dimension_semantics=("parallel",),
            vmem_limit_bytes=_VMEM_LIMIT_BYTES,
        ),
        cost_estimate=cost,
    )(x_flat, w1, b1_row, w2t, b2_col)


# ---------------------------------------------------------------------------
# Two-pass streaming path (VMEM bounded independent of H*W).
# ---------------------------------------------------------------------------
def _pool_kernel(x_ref, sum_ref, max_ref, *, hw_true, needs_mask):
    s = pl.program_id(1)

    @pl.when(s == 0)
    def _init():
        sum_ref[...] = jnp.zeros_like(sum_ref)
        max_ref[...] = jnp.full_like(max_ref, -jnp.inf)

    x = x_ref[...]  # (C, T)
    if needs_mask:
        c, t = x.shape
        lane = lax.broadcasted_iota(jnp.int32, (c, t), 1) + s * t
        valid = lane < hw_true
        x_for_sum = jnp.where(valid, x, 0.0)
        x_for_max = jnp.where(valid, x, -jnp.inf)
    else:
        x_for_sum = x
        x_for_max = x

    sum_ref[...] += jnp.sum(x_for_sum, axis=-1, keepdims=True)
    max_ref[...] = jnp.maximum(max_ref[...],
                               jnp.max(x_for_max, axis=-1, keepdims=True))


def _scale_kernel(x_ref, scale_ref, o_ref):
    # (C, T) * (C, 1) broadcast along lanes.
    o_ref[...] = x_ref[...] * scale_ref[...]


def _channel_gate_two_pass(x_flat, w1, b1, w2, b2, hw_true):
    B, C, HW = x_flat.shape

    max_tile = max(_LANE, (_TWO_PASS_TILE_BYTES // (C * 4)) // _LANE * _LANE)
    tile_hw = min(_round_up(HW, _LANE), max_tile)
    HWp = _round_up(HW, tile_hw)
    x_pad = x_flat if HWp == HW else jnp.pad(x_flat, ((0, 0), (0, 0), (0, HWp - HW)))
    n_tiles = HWp // tile_hw
    needs_mask = HWp != hw_true

    # Pass 1: streaming sum / max over spatial tiles (accumulator outputs).
    pool_kernel = functools.partial(_pool_kernel, hw_true=hw_true,
                                    needs_mask=needs_mask)
    sums, maxs = pl.pallas_call(
        pool_kernel,
        out_shape=(jax.ShapeDtypeStruct((B, C, 1), jnp.float32),
                   jax.ShapeDtypeStruct((B, C, 1), jnp.float32)),
        grid_spec=pltpu.PrefetchScalarGridSpec(
            num_scalar_prefetch=0,
            grid=(B, n_tiles),
            in_specs=[pl.BlockSpec((None, C, tile_hw), lambda b, s: (b, 0, s))],
            out_specs=(pl.BlockSpec((None, C, 1), lambda b, s: (b, 0, 0)),
                       pl.BlockSpec((None, C, 1), lambda b, s: (b, 0, 0))),
        ),
        compiler_params=pltpu.CompilerParams(
            dimension_semantics=("parallel", "arbitrary"),
            vmem_limit_bytes=_VMEM_LIMIT_BYTES,
        ),
        cost_estimate=pl.CostEstimate(flops=int(2 * B * C * HWp),
                                      transcendentals=0,
                                      bytes_accessed=int(B * C * HWp * 4)),
    )(x_pad)

    # Tiny MLP + sigmoid in plain JAX (FLOPs are negligible; keeps MXU off the
    # streaming pipeline's critical path).
    avg_pool = sums[:, :, 0] / hw_true
    max_pool = maxs[:, :, 0]

    def mlp(v):
        h = jnp.maximum(v @ w1 + b1, 0.0)
        return h @ w2 + b2

    scale = jax.nn.sigmoid(mlp(avg_pool) + mlp(max_pool))   # (B, C)
    scale3 = scale[:, :, None].astype(jnp.float32)          # (B, C, 1)

    # Pass 2: stream x again and apply the gate.
    out_pad = pl.pallas_call(
        _scale_kernel,
        out_shape=jax.ShapeDtypeStruct((B, C, HWp), jnp.float32),
        grid_spec=pltpu.PrefetchScalarGridSpec(
            num_scalar_prefetch=0,
            grid=(B, n_tiles),
            in_specs=[pl.BlockSpec((None, C, tile_hw), lambda b, s: (b, 0, s)),
                      pl.BlockSpec((None, C, 1), lambda b, s: (b, 0, 0))],
            out_specs=pl.BlockSpec((None, C, tile_hw), lambda b, s: (b, 0, s)),
        ),
        compiler_params=pltpu.CompilerParams(
            dimension_semantics=("parallel", "parallel"),
            vmem_limit_bytes=_VMEM_LIMIT_BYTES,
        ),
        cost_estimate=pl.CostEstimate(flops=int(B * C * HWp),
                                      transcendentals=0,
                                      bytes_accessed=int(2 * B * C * HWp * 4)),
    )(x_pad, scale3)

    return out_pad[:, :, :HW]


# ---------------------------------------------------------------------------
# Public wrapper.
# ---------------------------------------------------------------------------
def channel_gate(x, w1, b1, w2, b2, *, force_two_pass=False):
    """x: (B, C, H, W) float32 -> (B, C, H, W) float32 (pool_types=['avg','max'])."""
    B, C, H, W = x.shape
    HW = H * W
    x_flat = x.reshape(B, C, HW).astype(jnp.float32)
    w1 = w1.astype(jnp.float32)
    b1 = b1.astype(jnp.float32)
    w2 = w2.astype(jnp.float32)
    b2 = b2.astype(jnp.float32)

    HWp = _round_up(HW, _LANE)                  # lane-dense spatial extent
    block_bytes = C * HWp * 4

    if force_two_pass or block_bytes > _FUSED_BLOCK_BYTES:
        out_flat = _channel_gate_two_pass(x_flat, w1, b1, w2, b2, HW)
    else:
        if HWp != HW:
            x_flat = jnp.pad(x_flat, ((0, 0), (0, 0), (0, HWp - HW)))
        out_flat = _channel_gate_fused(
            x_flat, w1, b1.reshape(1, -1), w2.T, b2.reshape(-1, 1), HW)
        out_flat = out_flat[:, :, :HW]

    return out_flat.reshape(B, C, H, W)


def reference_channel_gate(x, w1, b1, w2, b2):
    """Pure-JAX reference mirroring the PyTorch forward (avg + max pools)."""
    B, C, H, W = x.shape
    xf = x.reshape(B, C, H * W)
    avg_pool = xf.mean(axis=-1)
    max_pool = xf.max(axis=-1)

    def mlp(v):
        h = jnp.maximum(v @ w1 + b1, 0.0)
        return h @ w2 + b2

    att = mlp(avg_pool) + mlp(max_pool)
    scale = jax.nn.sigmoid(att)
    return x * scale[:, :, None, None]


if __name__ == "__main__":
    # gate_channels must be >= reduction_ratio (=16) for a nonempty hidden dim.
    B, C, H, W = 2, 32, 16, 16
    reduction_ratio = 16
    hidden = C // reduction_ratio  # 2

    key = jax.random.PRNGKey(0)
    kx, k1, k2, k3, k4 = jax.random.split(key, 5)

    x = jax.random.normal(kx, (B, C, H, W), dtype=jnp.float32)
    w1 = jax.random.normal(k1, (C, hidden), dtype=jnp.float32) * 0.1
    b1 = jax.random.normal(k2, (hidden,), dtype=jnp.float32) * 0.1
    w2 = jax.random.normal(k3, (hidden, C), dtype=jnp.float32) * 0.1
    b2 = jax.random.normal(k4, (C,), dtype=jnp.float32) * 0.1

    # Fused (single-pass, batch-gridded) path.
    ref = reference_channel_gate(x, w1, b1, w2, b2)
    out = jax.block_until_ready(channel_gate(x, w1, b1, w2, b2))
    assert out.shape == (B, C, H, W)
    assert jnp.allclose(out, ref, atol=1e-5, rtol=1e-5), "fused path mismatch"

    # Non-multiple-of-128 spatial extent (exercises lane padding + masking)
    # plus the two-pass streaming path.
    x2 = jax.random.normal(kx, (B, C, 9, 7), dtype=jnp.float32)
    ref2 = reference_channel_gate(x2, w1, b1, w2, b2)

    out2 = jax.block_until_ready(channel_gate(x2, w1, b1, w2, b2))
    assert jnp.allclose(out2, ref2, atol=1e-5, rtol=1e-5), "padded fused mismatch"

    out2_tp = jax.block_until_ready(
        channel_gate(x2, w1, b1, w2, b2, force_two_pass=True))
    assert jnp.allclose(out2_tp, ref2, atol=1e-5, rtol=1e-5), "two-pass mismatch"

    print("KERNEL_OK")
</pallas_src>

<mosaic_0001>
module attributes {stable_mosaic.version = 11 : i64} {
  func.func @_fused_kernel(%arg0: i32, %arg1: memref<1x32x256xf32, #tpu.memory_space<vmem>>, %arg2: memref<32x2xf32, #tpu.memory_space<vmem>>, %arg3: memref<1x2xf32, #tpu.memory_space<vmem>>, %arg4: memref<32x2xf32, #tpu.memory_space<vmem>>, %arg5: memref<32x1xf32, #tpu.memory_space<vmem>>, %arg6: memref<1x32x256xf32, #tpu.memory_space<vmem>>) attributes {dimension_semantics = [#tpu.dimension_semantics<parallel>], iteration_bounds = array<i64: 2>, scalar_prefetch = 0 : i64, scratch_operands = 0 : i64, tpu.core_type = #tpu.core_type<tc>, window_params = [{transform_indices = @transform_0, window_bounds = array<i64: 1, 32, 256>}, {pipeline_mode = #tpu.pipeline_mode<synchronous>, transform_indices = @transform_1, window_bounds = array<i64: 32, 2>}, {pipeline_mode = #tpu.pipeline_mode<synchronous>, transform_indices = @transform_2, window_bounds = array<i64: 1, 2>}, {pipeline_mode = #tpu.pipeline_mode<synchronous>, transform_indices = @transform_3, window_bounds = array<i64: 32, 2>}, {pipeline_mode = #tpu.pipeline_mode<synchronous>, transform_indices = @transform_4, window_bounds = array<i64: 32, 1>}, {transform_indices = @transform_5, window_bounds = array<i64: 1, 32, 256>}]} {
    %c0 = arith.constant 0 : index
    %c0_0 = arith.constant 0 : index
    %c0_1 = arith.constant 0 : index
    %0 = vector.load %arg1[%c0, %c0_0, %c0_1] : memref<1x32x256xf32, #tpu.memory_space<vmem>>, vector<1x32x256xf32>
    %1 = vector.shape_cast %0 : vector<1x32x256xf32> to vector<32x256xf32>
    %cst = arith.constant dense<0.000000e+00> : vector<32xf32>
    %2 = vector.multi_reduction <add>, %1, %cst [1] : vector<32x256xf32> to vector<32xf32>
    %3 = vector.shape_cast %2 : vector<32xf32> to vector<32x1xf32>
    %cst_2 = arith.constant 3.906250e-03 : f32
    %4 = vector.broadcast %cst_2 : f32 to vector<32x1xf32>
    %5 = arith.mulf %3, %4 : vector<32x1xf32>
    %cst_3 = arith.constant dense<0xFF800000> : vector<32xf32>
    %6 = vector.multi_reduction <maximumf>, %1, %cst_3 [1] : vector<32x256xf32> to vector<32xf32>
    %7 = vector.shape_cast %6 : vector<32xf32> to vector<32x1xf32>
    %c0_4 = arith.constant 0 : index
    %c0_5 = arith.constant 0 : index
    %8 = vector.load %arg2[%c0_4, %c0_5] : memref<32x2xf32, #tpu.memory_space<vmem>>, vector<32x2xf32>
    %c0_6 = arith.constant 0 : index
    %c0_7 = arith.constant 0 : index
    %9 = vector.load %arg3[%c0_6, %c0_7] : memref<1x2xf32, #tpu.memory_space<vmem>>, vector<1x2xf32>
    %c0_8 = arith.constant 0 : index
    %c0_9 = arith.constant 0 : index
    %10 = vector.load %arg4[%c0_8, %c0_9] : memref<32x2xf32, #tpu.memory_space<vmem>>, vector<32x2xf32>
    %c0_10 = arith.constant 0 : index
    %c0_11 = arith.constant 0 : index
    %11 = vector.load %arg5[%c0_10, %c0_11] : memref<32x1xf32, #tpu.memory_space<vmem>>, vector<32x1xf32>
    %12 = vector.broadcast %5 : vector<32x1xf32> to vector<32x2xf32>
    %13 = arith.mulf %8, %12 : vector<32x2xf32>
    %cst_12 = arith.constant dense<0.000000e+00> : vector<2xf32>
    %14 = vector.multi_reduction <add>, %13, %cst_12 [0] : vector<32x2xf32> to vector<2xf32>
    %15 = vector.shape_cast %14 : vector<2xf32> to vector<1x2xf32>
    %16 = arith.addf %15, %9 : vector<1x2xf32>
    %cst_13 = arith.constant 0.000000e+00 : f32
    %17 = vector.broadcast %cst_13 : f32 to vector<1x2xf32>
    %18 = arith.maximumf %16, %17 : vector<1x2xf32>
    %19 = vector.broadcast %18 : vector<1x2xf32> to vector<32x2xf32>
    %20 = arith.mulf %10, %19 : vector<32x2xf32>
    %cst_14 = arith.constant dense<0.000000e+00> : vector<32xf32>
    %21 = vector.multi_reduction <add>, %20, %cst_14 [1] : vector<32x2xf32> to vector<32xf32>
    %22 = vector.shape_cast %21 : vector<32xf32> to vector<32x1xf32>
    %23 = arith.addf %22, %11 : vector<32x1xf32>
    %24 = vector.broadcast %7 : vector<32x1xf32> to vector<32x2xf32>
    %25 = arith.mulf %8, %24 : vector<32x2xf32>
    %cst_15 = arith.constant dense<0.000000e+00> : vector<2xf32>
    %26 = vector.multi_reduction <add>, %25, %cst_15 [0] : vector<32x2xf32> to vector<2xf32>
    %27 = vector.shape_cast %26 : vector<2xf32> to vector<1x2xf32>
    %28 = arith.addf %27, %9 : vector<1x2xf32>
    %cst_16 = arith.constant 0.000000e+00 : f32
    %29 = vector.broadcast %cst_16 : f32 to vector<1x2xf32>
    %30 = arith.maximumf %28, %29 : vector<1x2xf32>
    %31 = vector.broadcast %30 : vector<1x2xf32> to vector<32x2xf32>
    %32 = arith.mulf %10, %31 : vector<32x2xf32>
    %cst_17 = arith.constant dense<0.000000e+00> : vector<32xf32>
    %33 = vector.multi_reduction <add>, %32, %cst_17 [1] : vector<32x2xf32> to vector<32xf32>
    %34 = vector.shape_cast %33 : vector<32xf32> to vector<32x1xf32>
    %35 = arith.addf %34, %11 : vector<32x1xf32>
    %36 = arith.addf %23, %35 : vector<32x1xf32>
    %37 = arith.negf %36 : vector<32x1xf32>
    %38 = math.exp %37 : vector<32x1xf32>
    %cst_18 = arith.constant 1.000000e+00 : f32
    %39 = vector.broadcast %cst_18 : f32 to vector<32x1xf32>
    %40 = arith.addf %39, %38 : vector<32x1xf32>
    %41 = arith.divf %39, %40 : vector<32x1xf32>
    %42 = vector.broadcast %41 : vector<32x1xf32> to vector<32x256xf32>
    %43 = arith.mulf %1, %42 : vector<32x256xf32>
    %c0_19 = arith.constant 0 : index
    %c0_20 = arith.constant 0 : index
    %c0_21 = arith.constant 0 : index
    %44 = vector.load %arg6[%c0_19, %c0_20, %c0_21] : memref<1x32x256xf32, #tpu.memory_space<vmem>>, vector<1x32x256xf32>
    %45 = vector.shape_cast %44 : vector<1x32x256xf32> to vector<32x256xf32>
    %46 = vector.shape_cast %43 : vector<32x256xf32> to vector<1x32x256xf32>
    tpu.vector_store %arg6[%c0_19, %c0_20, %c0_21], %46 {strides = array<i32>} : memref<1x32x256xf32, #tpu.memory_space<vmem>>, vector<1x32x256xf32>,
    return
  }
  func.func @transform_0(%arg0: i32) -> (i32, i32, i32) {
    %c0_i32 = arith.constant 0 : i32
    %c0_i32_0 = arith.constant 0 : i32
    %c0_i32_1 = arith.constant 0 : i32
    return %arg0, %c0_i32, %c0_i32_0 : i32, i32, i32
  }
  func.func @transform_1(%arg0: i32) -> (i32, i32) {
    %c0_i32 = arith.constant 0 : i32
    %c0_i32_0 = arith.constant 0 : i32
    %c0_i32_1 = arith.constant 0 : i32
    return %c0_i32, %c0_i32_0 : i32, i32
  }
  func.func @transform_2(%arg0: i32) -> (i32, i32) {
    %c0_i32 = arith.constant 0 : i32
    %c0_i32_0 = arith.constant 0 : i32
    %c0_i32_1 = arith.constant 0 : i32
    return %c0_i32, %c0_i32_0 : i32, i32
  }
  func.func @transform_3(%arg0: i32) -> (i32, i32) {
    %c0_i32 = arith.constant 0 : i32
    %c0_i32_0 = arith.constant 0 : i32
    %c0_i32_1 = arith.constant 0 : i32
    return %c0_i32, %c0_i32_0 : i32, i32
  }
  func.func @transform_4(%arg0: i32) -> (i32, i32) {
    %c0_i32 = arith.constant 0 : i32
    %c0_i32_0 = arith.constant 0 : i32
    %c0_i32_1 = arith.constant 0 : i32
    return %c0_i32, %c0_i32_0 : i32, i32
  }
  func.func @transform_5(%arg0: i32) -> (i32, i32, i32) {
    %c0_i32 = arith.constant 0 : i32
    %c0_i32_0 = arith.constant 0 : i32
    %c0_i32_1 = arith.constant 0 : i32
    return %arg0, %c0_i32, %c0_i32_0 : i32, i32, i32
  }
}

</mosaic_0001>

<bundles_post_ra>
// kernel: tpu_custom_call.1
= control target key start
LH: loop header
LB: loop body
LE: loop exit
PB: predicated region body
PF: predicated region fallthrough
CT: control target
= control target key end

     0   :  { %10 = vsyncpa [#allocation3], 0  ;;  %s1015_s0 = inlined_call_operand.hbm [shape: f32[2,32,256], index: 0, kind: input, shape index: {}]   ;;  %s1016_s1 = inlined_call_operand.vmem [shape: f32[32,2], index: 1, kind: input, shape index: {}]   ;;  %s1017_s2 = inlined_call_operand.vmem [shape: f32[1,2], index: 2, kind: input, shape index: {}]   ;;  %s1018_s3 = inlined_call_operand.vmem [shape: f32[32,2], index: 3, kind: input, shape index: {}]   ;;  %s1019_s4 = inlined_call_operand.vmem [shape: f32[32,1], index: 4, kind: input, shape index: {}]   ;;  %s1020_s5 = inlined_call_operand.hbm [shape: f32[2,32,256], index: 5, kind: output, shape index: {}]  }
   0x1   :  { %12 = vsyncpa [#allocation3 + $0x1], 0 }
   0x2   :  { %13 = vsyncpa [#allocation4], 0 }
   0x3   :  { %15 = vsyncpa [#allocation4 + $0x1], 0  ;;  %s754_s18 = smov 0   ;;  %s756_s19 = smov 0  }
   0x4   :  { %s758_s20 = smov 0   ;;  %s760_s21 = smov 0  }
   0x5 LB: > { %s775_s22 = sadd.s32 4294967295, %s715_s21   ;;  %s530_s23 = sadd.s32 4294967294, %s715_s21   ;;  %s715_s21 = sphi %s760_s21, %s1033_s21   ;;  %s711_s20 = sphi %s758_s20, %s1032_s20   ;;  %s707_s19 = sphi %s756_s19, %s1031_s19   ;;  %s703_s18 = sphi %s754_s18, %s1030_s18  }
   0x6   : > { %s779_s24 = sadd.s32 1, %s715_s21   ;;  %s28_s25 = sadd.s32 1, %s711_s20 }
   0x7   : > { %s25_s26 = ssub.s32 %s715_s21, %s779_s24  ;;  %p35_p0 = scmp.ne.s32.totalorder %s711_s20, %s707_s19 }
   0x8   : > { %p26_p1 = scmp.eq.s32.totalorder %s25_s26, 0  ;;  %p36_p2 = scmp.eq.s32.totalorder %s715_s21, 0 }
   0x9   : > { %p41_p3 = scmp.ne.s32.totalorder %s707_s19, %s703_s18  ;;  %p42_p4 = scmp.eq.s32.totalorder %s775_s22, 0 }
   0xa   : > { %s791_s27 = scalar_select %p26_p1, %s711_s20, %s28_s25  }
   0xb   : > { %p793_p5 = por %p36_p2, %p35_p0  ;;  %p797_p6 = por %p42_p4, %p41_p3 }
   0xc   : > { %p149_p7 = scmp.eq.s32.totalorder %s775_s22, 1  ;;  %p155_p8 = scmp.eq.s32.totalorder %s530_s23, 1 }
   0xd   : > { %p562_p10 = scmp.lt.s32.totalorder %s715_s21, 2  ;;  %s187_s7 = sand.u32 1, %s711_s20  }
   0xe   : > { %p804_p11 = por %p149_p7, %p35_p0  ;;  %p808_p12 = por %p155_p8, %p41_p3 }
   0xf   : > { %s548_s8 = sshll.u32 %s715_s21, 10  ;;  %s533_s9 = sshll.u32 %s187_s7, 6 }
  0x10   : > { %s1024_s30 = scalar_select %p804_p11, 1, 0 }
  0x11   : > { %s1025_s6 = scalar_select %p808_p12, 1, 0 }
  0x12   : > { %s817_s12 = scalar_lea.hbm %s1015_s0, %s548_s8  ;;  %s191_s13 = scalar_lea.vmem [#allocation2], %s533_s9 }
  0x13   : > { %s198_s14 = sshll.u32 %s191_s13, 4  ;;  %p821_p13 = pnand %p562_p10, %p793_p5  ;;  %s825_s14 = int_to_ptr.vmem [resolvable:$true] %s198_s14 }
  0x14   : > { %s827_s16 = scalar_lea.sflag [#allocation3], %s187_s7  ;;  %s619_s17 = scalar_lea.hbm %s817_s12, 1024 }
  0x15   : > { %p620_p0 = scmp.ne.s32.totalorder %s817_s12, %s619_s17  ;;  %p621_p1 = pneg %p821_p13 }
  0x16   : > { %s624_s26 = scalar_lea.hbm %s1015_s0, 2048  ;;  %p625_p4 = scmp.lt.u32.totalorder %s817_s12, %s1015_s0 }
  0x17   : > { %p622_p2 = pnand %p621_p1, %p620_p0  ;;  %p626_p5 = scmp.lt.u32.totalorder %s624_s26, %s619_s17 }
  0x18   : > { %p628_p8 = scmp.lt.u32.totalorder %s619_s17, %s817_s12 }
  0x19   : > { %p623_p3 = pneg %p622_p2  ;;  %p627_p7 = por %p626_p5, %p625_p4 }
  0x1b   : > { %p629_p10 = por %p628_p8, %p627_p7 }
  0x1d   : > { %p630_p9 = pnand %p629_p10, %p623_p3 }
  0x1f   : > { %633 = shalt.err (!%p630_p9)
}
  0x20   : > { %s634_s7 = scalar_lea.vmem %s825_s14, 1024  ;;  %s717_s9 = smov [#allocation2]  }
  0x21   : > { %p635_p0 = scmp.ne.s32.totalorder %s825_s14, %s634_s7  ;;  %s639_s10 = sshll.u32 %s717_s9, 4  ;;  %s640_s10 = int_to_ptr.vmem [resolvable:$false] %s639_s10 }
  0x22   : > { %s641_s11 = scalar_lea.vmem %s640_s10, 2048  ;;  %p642_p11 = scmp.lt.s32.totalorder %s825_s14, %s640_s10 }
  0x23   : > { %p637_p2 = pnand %p635_p0, %p621_p1  ;;  %p643_p4 = scmp.lt.s32.totalorder %s641_s11, %s634_s7 }
  0x25   : > { %p638_p12 = pneg %p637_p2  ;;  %p644_p5 = por %p643_p4, %p642_p11 }
  0x27   : > { %p645_p7 = pnand %p644_p5, %p638_p12 }
  0x29   : > { %648 = shalt.err (!%p645_p7)
}
  0x2a   : > { %s718_s13 = smov 256   ;;  %s719_s17 = smov 16  }
  0x2b   : > { %557 = dma.hbm_to_vmem [thread:$0]  (!%p821_p13), %s817_s12, 1024, %s825_s14, %s827_s16, %s718_s13, %s718_s13, %s719_s17  }
  0x2c   : > { %p536_p9 = scmp.ge.s32.totalorder %s715_s21, 1  ;;  %p206_p1 = scmp.lt.s32.totalorder %s715_s21, 3 }
  0x2e   : > { %p207_p3 = pnand %p536_p9, %p206_p1 }
  0x2f   : > { %s858_s23 = sand.u32 (!%p207_p3), 1, %s707_s19  }
  0x30   : > { %210 = sbr.rel (%p207_p3) target bundleno = 576 (0x240), region = 40  ;;  %s537_s25 = sshll.u32 (!%p207_p3), %s858_s23, 6 }
  0x31   : > { %s213_s26 = scalar_lea.sflag (!%p207_p3), [#allocation3], %s858_s23  ;;  %s216_s28 = scalar_lea.vmem (!%p207_p3), [#allocation2], %s537_s25 }
  0x37   : > { %694 = dma.done.wait (%p797_p6), %s213_s26, 1024  }
  0x38   : > { %696 = vsyncadd (%p797_p6), %s213_s26, 4294966272  ;;  %v868_v0 = vld [vmem:[%s216_s28 + $0x20] sm:$0xff]  ;;  %v870_v1 = vld [vmem:[%s216_s28 + $0x28] sm:$0xff]  ;;  %vm296_vm0 = vcmask 15360   ;;  %v312_v62 = vlaneseq  ;;  %s242_s26 = scalar_lea.vmem [#allocation5], %s537_s25  ;;  %s549_s29 = sshll.u32 %s775_s22, 10 }
  0x39   : > { %v872_v2 = vld [vmem:[%s216_s28] sm:$0xff]  ;;  %v257_v3 = vadd.f32 %v870_v1, %v868_v0  ;;  %v876_v4 = vld [vmem:[%s216_s28 + $0x8] sm:$0xff]  ;;  %v878_v5 = vld [vmem:[%s216_s28 + $0x10] sm:$0xff]  ;;  %v273_v15 = vmax.f32 %v868_v0, %v870_v1  ;;  %s969_s14 = scalar_lea.hbm %s1020_s5, %s549_s29  ;;  %s444_s22 = scalar_lea.sflag [#allocation4], %s858_s23 }
  0x3a   : > { %v880_v6 = vld [vmem:[%s216_s28 + $0x18] sm:$0xff]  ;;  %v251_v7 = vadd.f32 %v876_v4, %v872_v2  ;;  %v267_v8 = vmax.f32 %v872_v2, %v876_v4  ;;  %v888_v10 = vld [vmem:[%s216_s28 + $0x30] sm:$0xff]  ;;  %v279_v19 = vld [vmem:[%s1016_s1] sm:$0xff]  ;;  %p1027_p11 = scmp.ne.s32.totalorder %s1024_s30, 0  ;;  %s721_s16 = smov [#allocation5]  }
  0x3b   : > { %258 = vadd.xlane.f32.xlu1 %v257_v3  ;;  %v254_v9 = vadd.f32 %v880_v6, %v878_v5  ;;  %v890_v11 = vld [vmem:[%s216_s28 + $0x38] sm:$0xff]  ;;  %v270_v13 = vmax.f32 %v878_v5, %v880_v6  ;;  %v280_v23 = vld [vmem:[%s1016_s1 + $0x8] sm:$0xff]  ;;  %v281_v24 = vld [vmem:[%s1016_s1 + $0x10] sm:$0xff]  ;;  %s457_s28 = sshll.u32 %s242_s26, 4  ;;  %s653_s8 = sshll.u32 %s721_s16, 4  ;;  %s964_s28 = int_to_ptr.vmem [resolvable:$true] %s457_s28  ;;  %s654_s8 = int_to_ptr.vmem [resolvable:$false] %s653_s8 }
  0x3c   : > { %252 = vadd.xlane.f32.xlu0 %v251_v7  ;;  %v260_v12 = vadd.f32 %v890_v11, %v888_v10  ;;  %v276_v14 = vmax.f32 %v888_v10, %v890_v11  ;;  %v282_v30 = vld [vmem:[%s1016_s1 + $0x18] sm:$0xff]  ;;  %v283_v63 = vld [vmem:[%s1017_s2] sm:$0x1]  ;;  %s649_s15 = scalar_lea.vmem %s964_s28, 1024  ;;  %s655_s7 = scalar_lea.vmem %s654_s8, 2048 }
  0x3d   : > { %p650_p6 = scmp.ne.s32.totalorder %s964_s28, %s649_s15  ;;  %p656_p8 = scmp.lt.s32.totalorder %s964_s28, %s654_s8 }
  0x3e   : > { %p657_p10 = scmp.lt.s32.totalorder %s655_s7, %s649_s15 }
  0x3f   : > { %268 = vmax.xlane.f32.xlu1 %v267_v8  ;;  %p651_p12 = pnand %p650_p6, %p1027_p11 }
  0x40   : > { %255 = vadd.xlane.f32.xlu0 %v254_v9  ;;  %v313_v9 = vshrl.u32 %v312_v62, 7  ;;  %p658_p0 = por %p657_p10, %p656_p8 }
  0x41   : > { %p652_p13 = pneg %p651_p12 }
  0x43   : > { %261 = vadd.xlane.f32.xlu1 %v260_v12  ;;  %p659_p2 = pnand %p658_p0, %p652_p13 }
  0x44   : > { %271 = vmax.xlane.f32.xlu0 %v270_v13 }
  0x47   : > { %277 = vmax.xlane.f32.xlu1 %v276_v14 }
  0x48   : > { %274 = vmax.xlane.f32.xlu0 %v273_v15  ;;  %v314_v15 = vsub.s32 0, %v313_v9 }
  0xc8   : > { %v259_v16 = vpop.xlane.xlu1 %258 }
  0xc9   : > { %v253_v17 = vpop.xlane.xlu0 %252  ;;  %v265_v20 = vmul.f32 0.00390625, %v259_v16 }
  0xca   : > { %v263_v18 = vmul.f32 0.00390625, %v253_v17 }
  0xcb   : > { %v294_v29 = vmul.f32 %v281_v24, %v265_v20  ;;  %v285_v20 = vld [vmem:[%s1018_s3 + $0x8] sm:$0xff] }
  0xcc   : > { %v269_v21 = vpop.xlane.xlu1 %268  ;;  %v292_v25 = vmul.f32 %v279_v19, %v263_v18 }
  0xcd   : > { %v256_v22 = vpop.xlane.xlu0 %255  ;;  %v336_v34 = vmul.f32 %v279_v19, %v269_v21  ;;  %v300_v40 = vsel %vm296_vm0, %v294_v29, 0.0  ;;  %v284_v21 = vld [vmem:[%s1018_s3] sm:$0xff]  ;;  %v286_v29 = vld [vmem:[%s1018_s3 + $0x10] sm:$0xff] }
  0xce   : > { %v264_v26 = vmul.f32 0.00390625, %v256_v22  ;;  %v297_v33 = vsel %vm296_vm0, %v292_v25, 0.0 }
  0xcf   : > { %v340_v46 = vsel %vm296_vm0, %v336_v34, 0.0 }
  0xd0   : > { %v262_v27 = vpop.xlane.xlu1 %261  ;;  %v293_v28 = vmul.f32 %v280_v23, %v264_v26 }
  0xd1   : > { %v266_v31 = vmul.f32 0.00390625, %v262_v27  ;;  %v272_v32 = vpop.xlane.xlu0 %271 }
  0xd2   : > { %v298_v35 = vsel %vm296_vm0, %v293_v28, 0.0  ;;  %v337_v36 = vmul.f32 %v280_v23, %v272_v32  ;;  %v287_v28 = vld [vmem:[%s1018_s3 + $0x18] sm:$0xff] }
  0xd3   : > { %v299_v37 = vadd.f32 %v298_v35, %v297_v33  ;;  %v295_v38 = vmul.f32 %v282_v30, %v266_v31 }
  0xd4   : > { %v341_v39 = vsel %vm296_vm0, %v337_v36, 0.0  ;;  %v278_v41 = vpop.xlane.xlu1 %277 }
  0xd5   : > { %v301_v42 = vadd.f32 %v300_v40, %v299_v37  ;;  %v275_v43 = vpop.xlane.xlu0 %274  ;;  %v302_v44 = vsel %vm296_vm0, %v295_v38, 0.0  ;;  %v339_v45 = vmul.f32 %v282_v30, %v278_v41  ;;  %v342_v48 = vadd.f32 %v341_v39, %v340_v46 }
  0xd6   : > { %v338_v47 = vmul.f32 %v281_v24, %v275_v43  ;;  %v720_v40 = vmov 0   ;;  %v289_v43 = vld [vmem:[%s1019_s4 + $0x8] sm:$0xff] }
  0xd7   : > { %v303_v49 = vadd.f32 %v302_v44, %v301_v42  ;;  %v345_v51 = vsel %vm296_vm0, %v339_v45, 0.0  ;;  %602 = vset.pattern.permute.xlu1 %v720_v40  ;;  %601 = vset.pattern.permute.xlu0 %v720_v40  ;;  %v288_v44 = vld [vmem:[%s1019_s4] sm:$0xff] }
  0xd8   : > { %v343_v50 = vsel %vm296_vm0, %v338_v47, 0.0 }
  0xd9   : > { %v344_v52 = vadd.f32 %v343_v50, %v342_v48  ;;  %v304_v53 = vrot.slane %v303_v49, 4 }
  0xdb   : > { %v305_v54 = vadd.f32 %v304_v53, %v303_v49  ;;  %v346_v55 = vadd.f32 %v345_v51, %v344_v52 }
  0xdd   : > { %v306_v56 = vrot.slane %v305_v54, 2  ;;  %v347_v57 = vrot.slane %v346_v55, 4 }
  0xdf   : > { %v307_v58 = vadd.f32 %v306_v56, %v305_v54  ;;  %v348_v59 = vadd.f32 %v347_v57, %v346_v55  ;;  %v291_v57 = vld [vmem:[%s1019_s4 + $0x18] sm:$0xff] }
  0xe1   : > { %v308_v60 = vrot.slane %v307_v58, 1  ;;  %v349_v61 = vrot.slane %v348_v59, 2 }
  0xe3   : > { %v309_v3 = vadd.f32 %v308_v60, %v307_v58  ;;  %v350_v7 = vadd.f32 %v349_v61, %v348_v59  ;;  %v290_v58 = vld [vmem:[%s1019_s4 + $0x10] sm:$0xff] }
  0xe5   : > { %v351_v8 = vrot.slane %v350_v7, 1  ;;  %v310_v12 = vadd.f32 %v309_v3, %v283_v63 }
  0xe7   : > { %v352_v13 = vadd.f32 %v351_v8, %v350_v7  ;;  %v311_v16 = vmax.f32 %v310_v12, 0.0 }
  0xe9   : > { %v353_v14 = vadd.f32 %v352_v13, %v283_v63  ;;  %v315_v19 = vrot.slane %v311_v16, %v314_v15 }
  0xeb   : > { %v354_v17 = vmax.f32 %v353_v14, 0.0  ;;  %v317_v26 = vmul.f32 %v315_v19, %v285_v20  ;;  %v316_v27 = vmul.f32 %v315_v19, %v284_v21  ;;  %v319_v32 = vmul.f32 %v315_v19, %v287_v28 }
  0xec   : > { %v318_v33 = vmul.f32 %v315_v19, %v286_v29 }
  0xed   : > { %v358_v18 = vrot.slane %v354_v17, %v314_v15  ;;  %v323_v30 = vsel %vm296_vm0, %v317_v26, 0.0  ;;  %v320_v31 = vsel %vm296_vm0, %v316_v27, 0.0  ;;  %v329_v34 = vsel %vm296_vm0, %v319_v32, 0.0 }
  0xee   : > { %v326_v35 = vsel %vm296_vm0, %v318_v33, 0.0 }
  0xef   : > { %v360_v22 = vmul.f32 %v358_v18, %v285_v20  ;;  %v359_v23 = vmul.f32 %v358_v18, %v284_v21  ;;  %v362_v36 = vmul.f32 %v358_v18, %v287_v28  ;;  %v361_v37 = vmul.f32 %v358_v18, %v286_v29 }
  0xf1   : > { %v366_v24 = vsel %vm296_vm0, %v360_v22, 0.0  ;;  %v363_v25 = vsel %vm296_vm0, %v359_v23, 0.0  ;;  %v372_v38 = vsel %vm296_vm0, %v362_v36, 0.0  ;;  %v369_v39 = vsel %vm296_vm0, %v361_v37, 0.0 }
  0xf2   : > { %367 = vadd.xlane.f32.xlu1 %v366_v24  ;;  %364 = vadd.xlane.f32.xlu0 %v363_v25 }
  0xf6   : > { %324 = vadd.xlane.f32.xlu1 %v323_v30  ;;  %321 = vadd.xlane.f32.xlu0 %v320_v31 }
  0xfa   : > { %330 = vadd.xlane.f32.xlu1 %v329_v34  ;;  %327 = vadd.xlane.f32.xlu0 %v326_v35 }
  0xfe   : > { %373 = vadd.xlane.f32.xlu1 %v372_v38  ;;  %370 = vadd.xlane.f32.xlu0 %v369_v39 }
 0x17f   : > { %v368_v41 = vpop.xlane.xlu1 %367  ;;  %v365_v42 = vpop.xlane.xlu0 %364 }
 0x180   : > { %v376_v47 = vadd.f32 %v368_v41, %v289_v43  ;;  %v375_v48 = vadd.f32 %v365_v42, %v288_v44 }
 0x183   : > { %v325_v45 = vpop.xlane.xlu1 %324  ;;  %v322_v46 = vpop.xlane.xlu0 %321 }
 0x184   : > { %v333_v49 = vadd.f32 %v325_v45, %v289_v43  ;;  %v332_v50 = vadd.f32 %v322_v46, %v288_v44 }
 0x186   : > { %v380_v51 = vadd.f32 %v376_v47, %v333_v49  ;;  %v379_v52 = vadd.f32 %v375_v48, %v332_v50 }
 0x187   : > { %v331_v53 = vpop.xlane.xlu1 %330  ;;  %v328_v54 = vpop.xlane.xlu0 %327 }
 0x188   : > { %v540_v55 = vmul.f32 -1.442695, %v380_v51  ;;  %v539_v56 = vmul.f32 -1.442695, %v379_v52  ;;  %v335_v61 = vadd.f32 %v331_v53, %v291_v57  ;;  %v334_v62 = vadd.f32 %v328_v54, %v290_v58 }
 0x18a   : > { %603 = vpow2.f32 %v540_v55 }
 0x18b   : > { %605 = vpow2.f32 %v539_v56  ;;  %v374_v59 = vpop.xlane.xlu1 %373  ;;  %v371_v60 = vpop.xlane.xlu0 %370 }
 0x18c   : > { %v378_v63 = vadd.f32 %v374_v59, %v291_v57  ;;  %v377_v3 = vadd.f32 %v371_v60, %v290_v58 }
 0x18e   : > { %v382_v7 = vadd.f32 %v378_v63, %v335_v61  ;;  %v381_v8 = vadd.f32 %v377_v3, %v334_v62 }
 0x190   : > { %v542_v9 = vmul.f32 -1.442695, %v382_v7  ;;  %v541_v12 = vmul.f32 -1.442695, %v381_v8 }
 0x192   : > { %607 = vpow2.f32 %v542_v9 }
 0x193   : > { %609 = vpow2.f32 %v541_v12 }
 0x194   : > { %v604_v13 = vpop.eup %603 }
 0x195   : > { %v606_v14 = vpop.eup %605  ;;  %v396_v15 = vadd.f32 1.0, %v604_v13 }
 0x196   : > { %v395_v16 = vadd.f32 1.0, %v606_v14 }
 0x197   : > { %611 = vrcp.f32 %v396_v15 }
 0x198   : > { %613 = vrcp.f32 %v395_v16 }
 0x19c   : > { %v608_v17 = vpop.eup %607 }
 0x19d   : > { %v610_v18 = vpop.eup %609  ;;  %v398_v20 = vadd.f32 1.0, %v608_v17 }
 0x19e   : > { %v397_v19 = vadd.f32 1.0, %v610_v18 }
 0x1a0   : > { %615 = vrcp.f32 %v397_v19 }
 0x1a1   : > { %v612_v21 = vpop.eup %611  ;;  %617 = vrcp.f32 %v398_v20 }
 0x1a2   : > { %v614_v22 = vpop.eup %613  ;;  %414 = vperm.xlu1 %602, %v612_v21  }
 0x1a3   : > { %409 = vperm.xlu0 %601, %v614_v22  }
 0x1aa   : > { %v616_v23 = vpop.eup %615 }
 0x1ab   : > { %419 = vperm.xlu1 %602, %v616_v23   ;;  %v618_v24 = vpop.eup %617 }
 0x1af   : > { %424 = vperm.xlu1 %602, %v618_v24  }
 0x221   : > { %v415_v25 = vpop.permute.xlu1 %414 }
 0x222   : > { %v429_v26 = vmul.f32 %v415_v25, %v878_v5  ;;  %v430_v27 = vmul.f32 %v415_v25, %v880_v6  ;;  %v410_v28 = vpop.permute.xlu0 %409 }
 0x223   : > { %v427_v29 = vmul.f32 %v410_v28, %v872_v2  ;;  %v428_v30 = vmul.f32 %v410_v28, %v876_v4 }
 0x224   : > { %437 = vst [vmem:[%s242_s26 + $0x10] sm:$0xff] %v429_v26  ;;  %438 = vst [vmem:[%s242_s26 + $0x18] sm:$0xff] %v430_v27 }
 0x225   : > { %435 = vst [vmem:[%s242_s26] sm:$0xff] %v427_v29  ;;  %436 = vst [vmem:[%s242_s26 + $0x8] sm:$0xff] %v428_v30 }
 0x22a   : > { %v420_v31 = vpop.permute.xlu1 %419 }
 0x22b   : > { %v431_v32 = vmul.f32 %v420_v31, %v868_v0  ;;  %v432_v5 = vmul.f32 %v420_v31, %v870_v1 }
 0x22d   : > { %439 = vst [vmem:[%s242_s26 + $0x20] sm:$0xff] %v431_v32  ;;  %440 = vst [vmem:[%s242_s26 + $0x28] sm:$0xff] %v432_v5 }
 0x22e   : > { %v425_v2 = vpop.permute.xlu1 %424 }
 0x22f   : > { %v433_v4 = vmul.f32 %v425_v2, %v888_v10  ;;  %v434_v0 = vmul.f32 %v425_v2, %v890_v11 }
 0x231   : > { %441 = vst [vmem:[%s242_s26 + $0x30] sm:$0xff] %v433_v4  ;;  %442 = vst [vmem:[%s242_s26 + $0x38] sm:$0xff] %v434_v0 }
 0x232   : > { %662 = shalt.err (!%p659_p2)
}
 0x233   : > { %s663_s9 = scalar_lea.hbm %s969_s14, 1024  ;;  %s667_s13 = scalar_lea.hbm %s1020_s5, 2048 }
 0x234   : > { %p664_p4 = scmp.ne.s32.totalorder %s969_s14, %s663_s9  ;;  %p668_p9 = scmp.lt.u32.totalorder %s969_s14, %s1020_s5 }
 0x235   : > { %p669_p1 = scmp.lt.u32.totalorder %s667_s13, %s663_s9  ;;  %p671_p6 = scmp.lt.u32.totalorder %s663_s9, %s969_s14 }
 0x236   : > { %p665_p5 = pnand %p664_p4, %p1027_p11 }
 0x237   : > { %p670_p3 = por %p669_p1, %p668_p9 }
 0x238   : > { %p666_p7 = pneg %p665_p5 }
 0x239   : > { %p672_p12 = por %p671_p6, %p670_p3 }
 0x23b   : > { %p673_p13 = pnand %p672_p12, %p666_p7 }
 0x23d   : > { %676 = shalt.err (!%p673_p13)
}
 0x23e   : > { %s722_s29 = smov 256   ;;  %s723_s25 = smov 16  }
 0x23f   : > { %552 = dma.vmem_to_hbm [thread:$0]  (%p1027_p11), %s964_s28, 1024, %s969_s14, %s444_s22, %s722_s29, %s722_s29, %s723_s25  }
 0x240 PF: > { %s472_s12 = sand.u32 1, %s703_s18   ;;  %p1028_p8 = scmp.ne.s32.totalorder %s1025_s6, 0 }
 0x241   : > { %p1029_p10 = scmp.ge.s32.totalorder %s715_s21, 2  ;;  %s473_s15 = scalar_lea.sflag [#allocation4], %s472_s12 }
 0x243   : > { %p559_p0 = pnand %p1029_p10, %p1028_p8 }
 0x245   : > { %698 = dma.done.wait (!%p559_p0), %s473_s15, 1024  }
 0x246   : > { %700 = vsyncadd (!%p559_p0), %s473_s15, 4294966272  ;;  %p18_p2 = scmp.ge.s32.totalorder %s779_s24, 4   ;;  %s1030_s18 = smov %s707_s19 }
 0x247   : > { %s1031_s19 = smov %s711_s20  ;;  %s1032_s20 = smov %s791_s27 }
 0x248   : > { %s1033_s21 = smov %s779_s24  ;;  %20 = sbr.rel (!%p18_p2) target bundleno = 5 (0x5), region = 85 }
 0x24f   :  { %478 = vsyncpa [#allocation3], 1 }
 0x250   :  { %480 = vsyncpa [#allocation3 + $0x1], 1 }
 0x251   :  { %481 = vsyncpa [#allocation4], 1 }
 0x252   :  { %483 = vsyncpa [#allocation4 + $0x1], 1 }

</bundles_post_ra>
